<compile_context>
chip_gen: v7x
topology: tpu7x:2x2x1
jax: 0.10.0
libtpu: 0.0.40
codegen_flags: <defaults>
</compile_context>

<pallas_src>
import math

import jax
import jax.numpy as jnp
from jax.experimental import pallas as pl
from jax.experimental.pallas import tpu as pltpu

LN_EPS = 1e-5  # torch.nn.LayerNorm default
VMEM_LIMIT = 32 * 1024 * 1024  # explicit; safe on v5e/v6e/v7x


# ----------------------------------------------------------------------------
# Tiling helpers
# ----------------------------------------------------------------------------
def _pick_batch_tile(b, cap=128):
    """Largest batch tile <= cap that divides b and respects the 8-sublane rule."""
    if b <= cap:
        return b
    for d in range(cap, 0, -1):
        if b % d == 0 and d % 8 == 0:
            return d
    return b  # fall back to the full batch (always legal: equals full dim)


def _pick_time_tile(t, cap=8):
    """Largest timestep block <= cap that divides t."""
    for d in range(min(t, cap), 0, -1):
        if t % d == 0:
            return d
    return 1


# ----------------------------------------------------------------------------
# Shared in-kernel cell math
# ----------------------------------------------------------------------------
def _layer_norm(z, gamma, beta):
    """Row-wise LayerNorm, two-pass variance (matches torch.nn.LayerNorm)."""
    mu = jnp.mean(z, axis=-1, keepdims=True)
    d = z - mu
    var = jnp.mean(d * d, axis=-1, keepdims=True)
    return d * jax.lax.rsqrt(var + LN_EPS) * gamma + beta


def _cell_math(x, h, c_f32, w_ih, w_hh, gi, bi, gh, bh, gc, bc):
    """One LayerNorm-LSTM step. x/h in MXU dtype, c and all LN math in f32."""
    H = c_f32.shape[-1]

    # Two direct MXU matmuls against VMEM-resident pre-transposed weights.
    ig = jnp.dot(x.astype(w_ih.dtype), w_ih, preferred_element_type=jnp.float32)
    hg = jnp.dot(h.astype(w_hh.dtype), w_hh, preferred_element_type=jnp.float32)

    gates = _layer_norm(ig, gi, bi) + _layer_norm(hg, gh, bh)   # (Bb, 4H) f32

    # Gate order matches torch.chunk: [in, forget, cell, out].
    ingate = jax.nn.sigmoid(gates[:, 0 * H:1 * H])
    forgetgate = jax.nn.sigmoid(gates[:, 1 * H:2 * H])
    cellgate = jnp.tanh(gates[:, 2 * H:3 * H])
    outgate = jax.nn.sigmoid(gates[:, 3 * H:4 * H])

    c_pre = forgetgate * c_f32 + ingate * cellgate
    cy = _layer_norm(c_pre, gc, bc)
    hy = outgate * jnp.tanh(cy)
    return hy, cy


# ----------------------------------------------------------------------------
# Single-step kernel (matches the PyTorch module's forward exactly)
# ----------------------------------------------------------------------------
def _lstm_cell_kernel(x_ref, hx_ref, cx_ref, wih_ref, whh_ref,
                      gi_ref, bi_ref, gh_ref, bh_ref, gc_ref, bc_ref,
                      hy_ref, cy_ref):
    hy, cy = _cell_math(
        x_ref[...], hx_ref[...], cx_ref[...].astype(jnp.float32),
        wih_ref[...], whh_ref[...],
        gi_ref[...], bi_ref[...], gh_ref[...], bh_ref[...],
        gc_ref[...], bc_ref[...])
    hy_ref[...] = hy.astype(hy_ref.dtype)
    cy_ref[...] = cy.astype(cy_ref.dtype)


def layer_norm_lstm_cell(x, state, prepared, *, block_b=None):
    """Pallas forward of LayerNormLSTMCell. Returns (hy, (hy, cy))."""
    hx, cx = state
    B, H = hx.shape
    K1 = x.shape[1]
    w_ih, w_hh = prepared["w_ih_t"], prepared["w_hh_t"]   # (K1,4H), (H,4H)
    gi, bi = prepared["ln_i_gamma"], prepared["ln_i_beta"]
    gh, bh = prepared["ln_h_gamma"], prepared["ln_h_beta"]
    gc, bc = prepared["ln_c_gamma"], prepared["ln_c_beta"]
    mdt = w_ih.dtype

    # bf16 (or f32) on the wire for the matmul operands; cx stays f32.
    x_m = x.astype(mdt)
    hx_m = hx.astype(mdt)

    if block_b is None:
        block_b = _pick_batch_tile(B, 128)
    grid = (pl.cdiv(B, block_b),)

    row_spec = lambda cols: pl.BlockSpec((block_b, cols), lambda i: (i, 0))
    const_spec = lambda shape: pl.BlockSpec(shape, lambda i: (0, 0))

    hy, cy = pl.pallas_call(
        _lstm_cell_kernel,
        out_shape=(jax.ShapeDtypeStruct((B, H), hx.dtype),
                   jax.ShapeDtypeStruct((B, H), hx.dtype)),
        grid=grid,
        in_specs=[
            row_spec(K1),                      # x (MXU dtype)
            row_spec(H),                       # hx (MXU dtype)
            row_spec(H),                       # cx
            const_spec(w_ih.shape),            # W_ih^T, VMEM-resident
            const_spec(w_hh.shape),            # W_hh^T, VMEM-resident
            const_spec((1, 4 * H)),            # ln_i gamma
            const_spec((1, 4 * H)),            # ln_i beta
            const_spec((1, 4 * H)),            # ln_h gamma
            const_spec((1, 4 * H)),            # ln_h beta
            const_spec((1, H)),                # ln_c gamma
            const_spec((1, H)),                # ln_c beta
        ],
        out_specs=(row_spec(H), row_spec(H)),
        compiler_params=pltpu.CompilerParams(
            dimension_semantics=("parallel",),
            vmem_limit_bytes=VMEM_LIMIT),
    )(x_m, hx_m, cx, w_ih, w_hh, gi, bi, gh, bh, gc, bc)
    return hy, (hy, cy)


# ----------------------------------------------------------------------------
# Full-sequence kernel: batch tiles (parallel) x timestep blocks (arbitrary).
# Weights fetched once, h/c carried in VMEM scratch, TT steps per grid step.
# ----------------------------------------------------------------------------
def _lstm_seq_kernel(xs_ref, h0_ref, c0_ref, wih_ref, whh_ref,
                     gi_ref, bi_ref, gh_ref, bh_ref, gc_ref, bc_ref,
                     hy_seq_ref, cy_fin_ref,
                     h_scr, c_scr):
    ti = pl.program_id(1)
    tt = xs_ref.shape[0]

    @pl.when(ti == 0)
    def _init():
        h_scr[...] = h0_ref[...].astype(jnp.float32)
        c_scr[...] = c0_ref[...].astype(jnp.float32)

    w_ih = wih_ref[...]
    w_hh = whh_ref[...]
    gi = gi_ref[...]; bi = bi_ref[...]
    gh = gh_ref[...]; bh = bh_ref[...]
    gc = gc_ref[...]; bc = bc_ref[...]

    def step(t, carry):
        h, c = carry
        hy, cy = _cell_math(xs_ref[t], h, c, w_ih, w_hh,
                            gi, bi, gh, bh, gc, bc)
        hy_seq_ref[t] = hy.astype(hy_seq_ref.dtype)
        return hy, cy

    h, c = jax.lax.fori_loop(0, tt, step, (h_scr[...], c_scr[...]),
                             unroll=True)
    h_scr[...] = h
    c_scr[...] = c
    # Only the final cell state goes back to HBM (constant index -> resident).
    cy_fin_ref[...] = c.astype(cy_fin_ref.dtype)


def layer_norm_lstm_sequence(xs, state, prepared, *, block_b=None, block_t=None):
    """Runs the cell over xs[t] for t=0..T-1 inside one Pallas kernel.

    Returns (hy_seq[T,B,H], (hy_final, cy_final)).
    """
    T, B, K1 = xs.shape
    hx, cx = state
    H = hx.shape[1]
    w_ih, w_hh = prepared["w_ih_t"], prepared["w_hh_t"]
    gi, bi = prepared["ln_i_gamma"], prepared["ln_i_beta"]
    gh, bh = prepared["ln_h_gamma"], prepared["ln_h_beta"]
    gc, bc = prepared["ln_c_gamma"], prepared["ln_c_beta"]
    mdt = w_ih.dtype

    xs_m = xs.astype(mdt)                         # half-width x DMA on the wire

    if block_b is None:
        block_b = _pick_batch_tile(B, 128)
    if block_t is None:
        block_t = _pick_time_tile(T, 8)
    grid = (pl.cdiv(B, block_b), T // block_t)    # (parallel batch, serial time)

    bstate_spec = pl.BlockSpec((block_b, H), lambda bi_, ti_: (bi_, 0))
    const2 = lambda shape: pl.BlockSpec(shape, lambda bi_, ti_: (0, 0))

    hy_seq, cy_fin = pl.pallas_call(
        _lstm_seq_kernel,
        out_shape=(jax.ShapeDtypeStruct((T, B, H), hx.dtype),
                   jax.ShapeDtypeStruct((B, H), hx.dtype)),
        grid=grid,
        in_specs=[
            pl.BlockSpec((block_t, block_b, K1),
                         lambda bi_, ti_: (ti_, bi_, 0)),          # x block
            bstate_spec,                                            # h0
            bstate_spec,                                            # c0
            const2(w_ih.shape),                                     # W_ih^T
            const2(w_hh.shape),                                     # W_hh^T
            const2((1, 4 * H)), const2((1, 4 * H)),                 # ln_i
            const2((1, 4 * H)), const2((1, 4 * H)),                 # ln_h
            const2((1, H)), const2((1, H)),                         # ln_c
        ],
        out_specs=(pl.BlockSpec((block_t, block_b, H),
                                lambda bi_, ti_: (ti_, bi_, 0)),    # hy sequence
                   bstate_spec),                                    # final cy only
        scratch_shapes=[
            pltpu.VMEM((block_b, H), jnp.float32),                  # h carry
            pltpu.VMEM((block_b, H), jnp.float32),                  # c carry
        ],
        compiler_params=pltpu.CompilerParams(
            dimension_semantics=("parallel", "arbitrary"),
            vmem_limit_bytes=VMEM_LIMIT),
    )(xs_m, hx, cx, w_ih, w_hh, gi, bi, gh, bh, gc, bc)
    return hy_seq, (hy_seq[-1], cy_fin)


# ----------------------------------------------------------------------------
# Parameters
# ----------------------------------------------------------------------------
def init_params(key, input_size, hidden_size, forget_gate_bias):
    """Deterministic init mirroring the PyTorch module's reset_parameters()."""
    stdv = 1.0 / math.sqrt(hidden_size)
    ks = jax.random.split(key, 8)
    u = lambda k, shape: jax.random.uniform(
        k, shape, dtype=jnp.float32, minval=-stdv, maxval=stdv)
    p = {
        "weight_ih": u(ks[0], (4 * hidden_size, input_size)),
        "weight_hh": u(ks[1], (4 * hidden_size, hidden_size)),
        "ln_i_gamma": u(ks[2], (4 * hidden_size,)),
        "ln_i_beta": u(ks[3], (4 * hidden_size,)),
        "ln_h_gamma": u(ks[4], (4 * hidden_size,)),
        "ln_h_beta": u(ks[5], (4 * hidden_size,)),
        "ln_c_gamma": u(ks[6], (hidden_size,)),
        "ln_c_beta": u(ks[7], (hidden_size,)),
    }
    # layernorm_i.bias[H:2H] = 0 ; layernorm_h.bias[H:2H] = forget_gate_bias
    p["ln_i_beta"] = p["ln_i_beta"].at[hidden_size:2 * hidden_size].set(0.0)
    p["ln_h_beta"] = p["ln_h_beta"].at[hidden_size:2 * hidden_size].set(
        forget_gate_bias)
    return p


def prepare_params(params, mxu_dtype=jnp.bfloat16):
    """One-time canonicalization: pre-transposed weights + 2-D f32 LN params."""
    prep = {
        "w_ih_t": params["weight_ih"].T.astype(mxu_dtype),   # (K1, 4H)
        "w_hh_t": params["weight_hh"].T.astype(mxu_dtype),   # (H, 4H)
    }
    for name in ("ln_i_gamma", "ln_i_beta", "ln_h_gamma", "ln_h_beta",
                 "ln_c_gamma", "ln_c_beta"):
        prep[name] = params[name].reshape(1, -1).astype(jnp.float32)
    return prep


# ----------------------------------------------------------------------------
# Pure-JAX reference (matches the PyTorch module semantics)
# ----------------------------------------------------------------------------
def _ln_ref(z, gamma, beta):
    mu = jnp.mean(z, axis=-1, keepdims=True)
    var = jnp.mean((z - mu) * (z - mu), axis=-1, keepdims=True)
    return (z - mu) * jax.lax.rsqrt(var + LN_EPS) * gamma + beta


def reference_forward(x, state, params):
    hx, cx = state
    hi = jnp.dot(x, params["weight_ih"].T, precision=jax.lax.Precision.HIGHEST)
    hh = jnp.dot(hx, params["weight_hh"].T, precision=jax.lax.Precision.HIGHEST)
    igates = _ln_ref(hi, params["ln_i_gamma"], params["ln_i_beta"])
    hgates = _ln_ref(hh, params["ln_h_gamma"], params["ln_h_beta"])
    gates = igates + hgates
    i, f, g, o = jnp.split(gates, 4, axis=1)
    i, f, g, o = jax.nn.sigmoid(i), jax.nn.sigmoid(f), jnp.tanh(g), jax.nn.sigmoid(o)
    cy = _ln_ref(f * cx + i * g, params["ln_c_gamma"], params["ln_c_beta"])
    hy = o * jnp.tanh(cy)
    return hy, (hy, cy)


def reference_sequence(xs, state, params):
    h, c = state
    hys = []
    for t in range(xs.shape[0]):
        hy, (h, c) = reference_forward(xs[t], (h, c), params)
        hys.append(hy)
    return jnp.stack(hys), (h, c)


# ----------------------------------------------------------------------------
if __name__ == "__main__":
    key = jax.random.PRNGKey(0)
    # Lane-dense small shapes: H = input = 128 -> every gate slice / output is
    # a whole 128-lane vreg (no masked partial stores).
    B, INPUT_SIZE, HIDDEN, T = 8, 128, 128, 12
    FORGET_GATE_BIAS = 1.0

    k_p, k_x, k_h, k_c, k_s = jax.random.split(key, 5)
    params = init_params(k_p, INPUT_SIZE, HIDDEN, FORGET_GATE_BIAS)
    x = jax.random.normal(k_x, (B, INPUT_SIZE), dtype=jnp.float32)
    hx = jax.random.normal(k_h, (B, HIDDEN), dtype=jnp.float32)
    cx = jax.random.normal(k_c, (B, HIDDEN), dtype=jnp.float32)
    xs = jax.random.normal(k_s, (T, B, INPUT_SIZE), dtype=jnp.float32)

    hy_ref, (_, cy_ref) = reference_forward(x, (hx, cx), params)
    hy_seq_ref, (h_last_ref, c_last_ref) = reference_sequence(xs, (hx, cx), params)

    # 1) Single step, f32 weights (validation path).
    prep_f32 = prepare_params(params, jnp.float32)
    hy, (_, cy) = layer_norm_lstm_cell(x, (hx, cx), prep_f32)
    jax.block_until_ready((hy, cy))
    assert jnp.allclose(hy, hy_ref, atol=1e-2, rtol=1e-2), "hy mismatch (f32)"
    assert jnp.allclose(cy, cy_ref, atol=1e-2, rtol=1e-2), "cy mismatch (f32)"

    # 2) Single step, bf16 MXU operands (fast path, looser tolerance).
    prep_bf16 = prepare_params(params, jnp.bfloat16)
    hy_b, (_, cy_b) = layer_norm_lstm_cell(x, (hx, cx), prep_bf16)
    jax.block_until_ready((hy_b, cy_b))
    assert jnp.allclose(hy_b, hy_ref, atol=2e-2, rtol=2e-2), "hy mismatch (bf16)"
    assert jnp.allclose(cy_b, cy_ref, atol=2e-2, rtol=2e-2), "cy mismatch (bf16)"

    # 3) Full sequence inside one kernel (weights VMEM-resident across T steps).
    hy_seq, (hy_last, cy_last) = layer_norm_lstm_sequence(xs, (hx, cx), prep_bf16)
    jax.block_until_ready((hy_seq, hy_last, cy_last))
    assert jnp.allclose(hy_seq, hy_seq_ref, atol=3e-2, rtol=3e-2), "seq hy mismatch"
    assert jnp.allclose(hy_last, h_last_ref, atol=3e-2, rtol=3e-2), "seq h_last mismatch"
    assert jnp.allclose(cy_last, c_last_ref, atol=3e-2, rtol=3e-2), "seq cy mismatch"

    print("KERNEL_OK")
</pallas_src>

<mosaic_0001>
module attributes {stable_mosaic.version = 11 : i64} {
  func.func @_lstm_cell_kernel(%arg0: i32, %arg1: memref<8x128xf32, #tpu.memory_space<vmem>>, %arg2: memref<8x128xf32, #tpu.memory_space<vmem>>, %arg3: memref<8x128xf32, #tpu.memory_space<vmem>>, %arg4: memref<128x512xf32, #tpu.memory_space<vmem>>, %arg5: memref<128x512xf32, #tpu.memory_space<vmem>>, %arg6: memref<1x512xf32, #tpu.memory_space<vmem>>, %arg7: memref<1x512xf32, #tpu.memory_space<vmem>>, %arg8: memref<1x512xf32, #tpu.memory_space<vmem>>, %arg9: memref<1x512xf32, #tpu.memory_space<vmem>>, %arg10: memref<1x128xf32, #tpu.memory_space<vmem>>, %arg11: memref<1x128xf32, #tpu.memory_space<vmem>>, %arg12: memref<8x128xf32, #tpu.memory_space<vmem>>, %arg13: memref<8x128xf32, #tpu.memory_space<vmem>>) attributes {dimension_semantics = [#tpu.dimension_semantics<parallel>], iteration_bounds = array<i64: 1>, scalar_prefetch = 0 : i64, scratch_operands = 0 : i64, tpu.core_type = #tpu.core_type<tc>, window_params = [{transform_indices = @transform_0, window_bounds = array<i64: 8, 128>}, {transform_indices = @transform_1, window_bounds = array<i64: 8, 128>}, {transform_indices = @transform_2, window_bounds = array<i64: 8, 128>}, {pipeline_mode = #tpu.pipeline_mode<synchronous>, transform_indices = @transform_3, window_bounds = array<i64: 128, 512>}, {pipeline_mode = #tpu.pipeline_mode<synchronous>, transform_indices = @transform_4, window_bounds = array<i64: 128, 512>}, {pipeline_mode = #tpu.pipeline_mode<synchronous>, transform_indices = @transform_5, window_bounds = array<i64: 1, 512>}, {pipeline_mode = #tpu.pipeline_mode<synchronous>, transform_indices = @transform_6, window_bounds = array<i64: 1, 512>}, {pipeline_mode = #tpu.pipeline_mode<synchronous>, transform_indices = @transform_7, window_bounds = array<i64: 1, 512>}, {pipeline_mode = #tpu.pipeline_mode<synchronous>, transform_indices = @transform_8, window_bounds = array<i64: 1, 512>}, {pipeline_mode = #tpu.pipeline_mode<synchronous>, transform_indices = @transform_9, window_bounds = array<i64: 1, 128>}, {pipeline_mode = #tpu.pipeline_mode<synchronous>, transform_indices = @transform_10, window_bounds = array<i64: 1, 128>}, {transform_indices = @transform_11, window_bounds = array<i64: 8, 128>}, {transform_indices = @transform_12, window_bounds = array<i64: 8, 128>}]} {
    %c0 = arith.constant 0 : index
    %c0_0 = arith.constant 0 : index
    %0 = vector.load %arg1[%c0, %c0_0] : memref<8x128xf32, #tpu.memory_space<vmem>>, vector<8x128xf32>
    %c0_1 = arith.constant 0 : index
    %c0_2 = arith.constant 0 : index
    %1 = vector.load %arg2[%c0_1, %c0_2] : memref<8x128xf32, #tpu.memory_space<vmem>>, vector<8x128xf32>
    %c0_3 = arith.constant 0 : index
    %c0_4 = arith.constant 0 : index
    %2 = vector.load %arg3[%c0_3, %c0_4] : memref<8x128xf32, #tpu.memory_space<vmem>>, vector<8x128xf32>
    %c0_5 = arith.constant 0 : index
    %c0_6 = arith.constant 0 : index
    %3 = vector.load %arg4[%c0_5, %c0_6] : memref<128x512xf32, #tpu.memory_space<vmem>>, vector<128x512xf32>
    %c0_7 = arith.constant 0 : index
    %c0_8 = arith.constant 0 : index
    %4 = vector.load %arg5[%c0_7, %c0_8] : memref<128x512xf32, #tpu.memory_space<vmem>>, vector<128x512xf32>
    %c0_9 = arith.constant 0 : index
    %c0_10 = arith.constant 0 : index
    %5 = vector.load %arg6[%c0_9, %c0_10] : memref<1x512xf32, #tpu.memory_space<vmem>>, vector<1x512xf32>
    %c0_11 = arith.constant 0 : index
    %c0_12 = arith.constant 0 : index
    %6 = vector.load %arg7[%c0_11, %c0_12] : memref<1x512xf32, #tpu.memory_space<vmem>>, vector<1x512xf32>
    %c0_13 = arith.constant 0 : index
    %c0_14 = arith.constant 0 : index
    %7 = vector.load %arg8[%c0_13, %c0_14] : memref<1x512xf32, #tpu.memory_space<vmem>>, vector<1x512xf32>
    %c0_15 = arith.constant 0 : index
    %c0_16 = arith.constant 0 : index
    %8 = vector.load %arg9[%c0_15, %c0_16] : memref<1x512xf32, #tpu.memory_space<vmem>>, vector<1x512xf32>
    %c0_17 = arith.constant 0 : index
    %c0_18 = arith.constant 0 : index
    %9 = vector.load %arg10[%c0_17, %c0_18] : memref<1x128xf32, #tpu.memory_space<vmem>>, vector<1x128xf32>
    %c0_19 = arith.constant 0 : index
    %c0_20 = arith.constant 0 : index
    %10 = vector.load %arg11[%c0_19, %c0_20] : memref<1x128xf32, #tpu.memory_space<vmem>>, vector<1x128xf32>
    %cst = arith.constant dense<0.000000e+00> : vector<8x512xf32>
    %11 = tpu.matmul %0, %3, %cst {dimension_numbers = #tpu.dot_dimension_numbers<[1], [0], [0], [1], [0, 0, 1, 1], [], []>} : vector<8x128xf32>, vector<128x512xf32>, vector<8x512xf32> -> vector<8x512xf32>
    %cst_21 = arith.constant dense<0.000000e+00> : vector<8x512xf32>
    %12 = tpu.matmul %1, %4, %cst_21 {dimension_numbers = #tpu.dot_dimension_numbers<[1], [0], [0], [1], [0, 0, 1, 1], [], []>} : vector<8x128xf32>, vector<128x512xf32>, vector<8x512xf32> -> vector<8x512xf32>
    %cst_22 = arith.constant dense<0.000000e+00> : vector<8xf32>
    %13 = vector.multi_reduction <add>, %11, %cst_22 [1] : vector<8x512xf32> to vector<8xf32>
    %14 = vector.shape_cast %13 : vector<8xf32> to vector<8x1xf32>
    %cst_23 = arith.constant 5.120000e+02 : f32
    %15 = vector.broadcast %cst_23 : f32 to vector<8x1xf32>
    %16 = arith.divf %14, %15 : vector<8x1xf32>
    %17 = vector.broadcast %16 : vector<8x1xf32> to vector<8x512xf32>
    %18 = arith.subf %11, %17 : vector<8x512xf32>
    %19 = arith.mulf %18, %18 : vector<8x512xf32>
    %cst_24 = arith.constant dense<0.000000e+00> : vector<8xf32>
    %20 = vector.multi_reduction <add>, %19, %cst_24 [1] : vector<8x512xf32> to vector<8xf32>
    %21 = vector.shape_cast %20 : vector<8xf32> to vector<8x1xf32>
    %cst_25 = arith.constant 5.120000e+02 : f32
    %22 = vector.broadcast %cst_25 : f32 to vector<8x1xf32>
    %23 = arith.divf %21, %22 : vector<8x1xf32>
    %cst_26 = arith.constant 9.99999974E-6 : f32
    %24 = vector.broadcast %cst_26 : f32 to vector<8x1xf32>
    %25 = arith.addf %23, %24 : vector<8x1xf32>
    %26 = math.rsqrt %25 : vector<8x1xf32>
    %27 = vector.broadcast %26 : vector<8x1xf32> to vector<8x512xf32>
    %28 = arith.mulf %18, %27 : vector<8x512xf32>
    %29 = vector.broadcast %5 : vector<1x512xf32> to vector<8x512xf32>
    %30 = arith.mulf %28, %29 : vector<8x512xf32>
    %31 = vector.broadcast %6 : vector<1x512xf32> to vector<8x512xf32>
    %32 = arith.addf %30, %31 : vector<8x512xf32>
    %cst_27 = arith.constant dense<0.000000e+00> : vector<8xf32>
    %33 = vector.multi_reduction <add>, %12, %cst_27 [1] : vector<8x512xf32> to vector<8xf32>
    %34 = vector.shape_cast %33 : vector<8xf32> to vector<8x1xf32>
    %cst_28 = arith.constant 5.120000e+02 : f32
    %35 = vector.broadcast %cst_28 : f32 to vector<8x1xf32>
    %36 = arith.divf %34, %35 : vector<8x1xf32>
    %37 = vector.broadcast %36 : vector<8x1xf32> to vector<8x512xf32>
    %38 = arith.subf %12, %37 : vector<8x512xf32>
    %39 = arith.mulf %38, %38 : vector<8x512xf32>
    %cst_29 = arith.constant dense<0.000000e+00> : vector<8xf32>
    %40 = vector.multi_reduction <add>, %39, %cst_29 [1] : vector<8x512xf32> to vector<8xf32>
    %41 = vector.shape_cast %40 : vector<8xf32> to vector<8x1xf32>
    %cst_30 = arith.constant 5.120000e+02 : f32
    %42 = vector.broadcast %cst_30 : f32 to vector<8x1xf32>
    %43 = arith.divf %41, %42 : vector<8x1xf32>
    %cst_31 = arith.constant 9.99999974E-6 : f32
    %44 = vector.broadcast %cst_31 : f32 to vector<8x1xf32>
    %45 = arith.addf %43, %44 : vector<8x1xf32>
    %46 = math.rsqrt %45 : vector<8x1xf32>
    %47 = vector.broadcast %46 : vector<8x1xf32> to vector<8x512xf32>
    %48 = arith.mulf %38, %47 : vector<8x512xf32>
    %49 = vector.broadcast %7 : vector<1x512xf32> to vector<8x512xf32>
    %50 = arith.mulf %48, %49 : vector<8x512xf32>
    %51 = vector.broadcast %8 : vector<1x512xf32> to vector<8x512xf32>
    %52 = arith.addf %50, %51 : vector<8x512xf32>
    %53 = arith.addf %32, %52 : vector<8x512xf32>
    %54 = vector.extract_strided_slice %53 {offsets = [0, 0], sizes = [8, 128], strides = [1, 1]} : vector<8x512xf32> to vector<8x128xf32>
    %55 = arith.negf %54 : vector<8x128xf32>
    %56 = math.exp %55 : vector<8x128xf32>
    %cst_32 = arith.constant 1.000000e+00 : f32
    %57 = vector.broadcast %cst_32 : f32 to vector<8x128xf32>
    %58 = arith.addf %57, %56 : vector<8x128xf32>
    %59 = arith.divf %57, %58 : vector<8x128xf32>
    %60 = vector.extract_strided_slice %53 {offsets = [0, 128], sizes = [8, 128], strides = [1, 1]} : vector<8x512xf32> to vector<8x128xf32>
    %61 = arith.negf %60 : vector<8x128xf32>
    %62 = math.exp %61 : vector<8x128xf32>
    %cst_33 = arith.constant 1.000000e+00 : f32
    %63 = vector.broadcast %cst_33 : f32 to vector<8x128xf32>
    %64 = arith.addf %63, %62 : vector<8x128xf32>
    %65 = arith.divf %63, %64 : vector<8x128xf32>
    %66 = vector.extract_strided_slice %53 {offsets = [0, 256], sizes = [8, 128], strides = [1, 1]} : vector<8x512xf32> to vector<8x128xf32>
    %67 = math.tanh %66 : vector<8x128xf32>
    %68 = vector.extract_strided_slice %53 {offsets = [0, 384], sizes = [8, 128], strides = [1, 1]} : vector<8x512xf32> to vector<8x128xf32>
    %69 = arith.negf %68 : vector<8x128xf32>
    %70 = math.exp %69 : vector<8x128xf32>
    %cst_34 = arith.constant 1.000000e+00 : f32
    %71 = vector.broadcast %cst_34 : f32 to vector<8x128xf32>
    %72 = arith.addf %71, %70 : vector<8x128xf32>
    %73 = arith.divf %71, %72 : vector<8x128xf32>
    %74 = arith.mulf %65, %2 : vector<8x128xf32>
    %75 = arith.mulf %59, %67 : vector<8x128xf32>
    %76 = arith.addf %74, %75 : vector<8x128xf32>
    %cst_35 = arith.constant dense<0.000000e+00> : vector<8xf32>
    %77 = vector.multi_reduction <add>, %76, %cst_35 [1] : vector<8x128xf32> to vector<8xf32>
    %78 = vector.shape_cast %77 : vector<8xf32> to vector<8x1xf32>
    %cst_36 = arith.constant 1.280000e+02 : f32
    %79 = vector.broadcast %cst_36 : f32 to vector<8x1xf32>
    %80 = arith.divf %78, %79 : vector<8x1xf32>
    %81 = vector.broadcast %80 : vector<8x1xf32> to vector<8x128xf32>
    %82 = arith.subf %76, %81 : vector<8x128xf32>
    %83 = arith.mulf %82, %82 : vector<8x128xf32>
    %cst_37 = arith.constant dense<0.000000e+00> : vector<8xf32>
    %84 = vector.multi_reduction <add>, %83, %cst_37 [1] : vector<8x128xf32> to vector<8xf32>
    %85 = vector.shape_cast %84 : vector<8xf32> to vector<8x1xf32>
    %cst_38 = arith.constant 1.280000e+02 : f32
    %86 = vector.broadcast %cst_38 : f32 to vector<8x1xf32>
    %87 = arith.divf %85, %86 : vector<8x1xf32>
    %cst_39 = arith.constant 9.99999974E-6 : f32
    %88 = vector.broadcast %cst_39 : f32 to vector<8x1xf32>
    %89 = arith.addf %87, %88 : vector<8x1xf32>
    %90 = math.rsqrt %89 : vector<8x1xf32>
    %91 = vector.broadcast %90 : vector<8x1xf32> to vector<8x128xf32>
    %92 = arith.mulf %82, %91 : vector<8x128xf32>
    %93 = vector.broadcast %9 : vector<1x128xf32> to vector<8x128xf32>
    %94 = arith.mulf %92, %93 : vector<8x128xf32>
    %95 = vector.broadcast %10 : vector<1x128xf32> to vector<8x128xf32>
    %96 = arith.addf %94, %95 : vector<8x128xf32>
    %97 = math.tanh %96 : vector<8x128xf32>
    %98 = arith.mulf %73, %97 : vector<8x128xf32>
    %c0_40 = arith.constant 0 : index
    %c0_41 = arith.constant 0 : index
    %99 = vector.load %arg12[%c0_40, %c0_41] : memref<8x128xf32, #tpu.memory_space<vmem>>, vector<8x128xf32>
    tpu.vector_store %arg12[%c0_40, %c0_41], %98 {strides = array<i32>} : memref<8x128xf32, #tpu.memory_space<vmem>>, vector<8x128xf32>,
    %c0_42 = arith.constant 0 : index
    %c0_43 = arith.constant 0 : index
    %100 = vector.load %arg13[%c0_42, %c0_43] : memref<8x128xf32, #tpu.memory_space<vmem>>, vector<8x128xf32>
    tpu.vector_store %arg13[%c0_42, %c0_43], %96 {strides = array<i32>} : memref<8x128xf32, #tpu.memory_space<vmem>>, vector<8x128xf32>,
    return
  }
  func.func @transform_0(%arg0: i32) -> (i32, i32) {
    %c0_i32 = arith.constant 0 : i32
    %c0_i32_0 = arith.constant 0 : i32
    return %arg0, %c0_i32 : i32, i32
  }
  func.func @transform_1(%arg0: i32) -> (i32, i32) {
    %c0_i32 = arith.constant 0 : i32
    %c0_i32_0 = arith.constant 0 : i32
    return %arg0, %c0_i32 : i32, i32
  }
  func.func @transform_2(%arg0: i32) -> (i32, i32) {
    %c0_i32 = arith.constant 0 : i32
    %c0_i32_0 = arith.constant 0 : i32
    return %arg0, %c0_i32 : i32, i32
  }
  func.func @transform_3(%arg0: i32) -> (i32, i32) {
    %c0_i32 = arith.constant 0 : i32
    %c0_i32_0 = arith.constant 0 : i32
    %c0_i32_1 = arith.constant 0 : i32
    return %c0_i32, %c0_i32_0 : i32, i32
  }
  func.func @transform_4(%arg0: i32) -> (i32, i32) {
    %c0_i32 = arith.constant 0 : i32
    %c0_i32_0 = arith.constant 0 : i32
    %c0_i32_1 = arith.constant 0 : i32
    return %c0_i32, %c0_i32_0 : i32, i32
  }
  func.func @transform_5(%arg0: i32) -> (i32, i32) {
    %c0_i32 = arith.constant 0 : i32
    %c0_i32_0 = arith.constant 0 : i32
    %c0_i32_1 = arith.constant 0 : i32
    return %c0_i32, %c0_i32_0 : i32, i32
  }
  func.func @transform_6(%arg0: i32) -> (i32, i32) {
    %c0_i32 = arith.constant 0 : i32
    %c0_i32_0 = arith.constant 0 : i32
    %c0_i32_1 = arith.constant 0 : i32
    return %c0_i32, %c0_i32_0 : i32, i32
  }
  func.func @transform_7(%arg0: i32) -> (i32, i32) {
    %c0_i32 = arith.constant 0 : i32
    %c0_i32_0 = arith.constant 0 : i32
    %c0_i32_1 = arith.constant 0 : i32
    return %c0_i32, %c0_i32_0 : i32, i32
  }
  func.func @transform_8(%arg0: i32) -> (i32, i32) {
    %c0_i32 = arith.constant 0 : i32
    %c0_i32_0 = arith.constant 0 : i32
    %c0_i32_1 = arith.constant 0 : i32
    return %c0_i32, %c0_i32_0 : i32, i32
  }
  func.func @transform_9(%arg0: i32) -> (i32, i32) {
    %c0_i32 = arith.constant 0 : i32
    %c0_i32_0 = arith.constant 0 : i32
    %c0_i32_1 = arith.constant 0 : i32
    return %c0_i32, %c0_i32_0 : i32, i32
  }
  func.func @transform_10(%arg0: i32) -> (i32, i32) {
    %c0_i32 = arith.constant 0 : i32
    %c0_i32_0 = arith.constant 0 : i32
    %c0_i32_1 = arith.constant 0 : i32
    return %c0_i32, %c0_i32_0 : i32, i32
  }
  func.func @transform_11(%arg0: i32) -> (i32, i32) {
    %c0_i32 = arith.constant 0 : i32
    %c0_i32_0 = arith.constant 0 : i32
    return %arg0, %c0_i32 : i32, i32
  }
  func.func @transform_12(%arg0: i32) -> (i32, i32) {
    %c0_i32 = arith.constant 0 : i32
    %c0_i32_0 = arith.constant 0 : i32
    return %arg0, %c0_i32 : i32, i32
  }
}

</mosaic_0001>

<bundles_post_ra>
// kernel: tpu_custom_call.1
= control target key start
LH: loop header
LB: loop body
LE: loop exit
PB: predicated region body
PF: predicated region fallthrough
CT: control target
= control target key end

     0   :  { %18 = vsyncpa [#allocation3], 0  ;;  %s1305_s0 = inlined_call_operand.hbm [shape: f32[8,128], index: 0, kind: input, shape index: {}]   ;;  %s1306_s1 = inlined_call_operand.hbm [shape: f32[8,128], index: 1, kind: input, shape index: {}]   ;;  %s1307_s2 = inlined_call_operand.hbm [shape: f32[8,128], index: 2, kind: input, shape index: {}]   ;;  %s1308_s3 = inlined_call_operand.hbm [shape: f32[128,512], index: 3, kind: input, shape index: {}]   ;;  %s1309_s4 = inlined_call_operand.hbm [shape: f32[128,512], index: 4, kind: input, shape index: {}]   ;;  %s1310_s5 = inlined_call_operand.vmem [shape: f32[1,512], index: 5, kind: input, shape index: {}]   ;;  %s1311_s6 = inlined_call_operand.vmem [shape: f32[1,512], index: 6, kind: input, shape index: {}]   ;;  %s1312_s7 = inlined_call_operand.vmem [shape: f32[1,512], index: 7, kind: input, shape index: {}]   ;;  %s1313_s8 = inlined_call_operand.vmem [shape: f32[1,512], index: 8, kind: input, shape index: {}]   ;;  %s1314_s9 = inlined_call_operand.vmem [shape: f32[1,128], index: 9, kind: input, shape index: {}]   ;;  %s1315_s10 = inlined_call_operand.vmem [shape: f32[1,128], index: 10, kind: input, shape index: {}]   ;;  %s1316_s11 = inlined_call_operand.hbm [shape: f32[8,128], index: 11, kind: output, shape index: {0}]   ;;  %s1317_s12 = inlined_call_operand.hbm [shape: f32[8,128], index: 12, kind: output, shape index: {1}]  }
   0x1   :  { %19 = vsyncpa [#allocation6], 0 }
   0x2   :  { %20 = vsyncpa [#allocation9], 0 }
   0x3   :  { %21 = vsyncpa [#allocation4], 0 }
   0x4   :  { %22 = vsyncpa [#allocation13], 0  ;;  %s1094_s21 = smov [#allocation5]   ;;  %s1095_s23 = smov [#allocation8]  }
   0x5   :  { %s39_s22 = sshll.u32 %s1094_s21, 4  ;;  %s58_s24 = sshll.u32 %s1095_s23, 4  ;;  %s40_s22 = int_to_ptr.vmem [resolvable:$true] %s39_s22  ;;  %s1169_s24 = int_to_ptr.vmem [resolvable:$true] %s58_s24 }
   0x6   :  { %s930_s27 = scalar_lea.hbm %s1306_s1, 128 }
   0x7   :  { %p931_p0 = scmp.ne.s32.totalorder %s1306_s1, %s930_s27  ;;  %p934_p1 = scmp.lt.u32.totalorder %s930_s27, %s1306_s1 }
   0x9   :  { %p936_p2 = pnand %p934_p1, %p931_p0 }
   0xb   :  { %939 = shalt.err (!%p936_p2)
}
   0xc   :  { %s940_s14 = scalar_lea.vmem %s40_s22, 128  ;;  %p945_p4 = scmp.lt.s32.totalorder %s40_s22, %s40_s22 }
   0xd   :  { %p941_p3 = scmp.ne.s32.totalorder %s40_s22, %s940_s14  ;;  %p946_p5 = scmp.lt.s32.totalorder %s940_s14, %s940_s14 }
   0xf   :  { %p947_p6 = por %p946_p5, %p945_p4 }
  0x11   :  { %p948_p7 = pnand %p947_p6, %p941_p3 }
  0x13   :  { %951 = shalt.err (!%p948_p7)
}
  0x14   :  { %42 = dma.hbm_to_vmem [thread:$0]  %s1306_s1, 128, %s40_s22, [#allocation6]  }
  0x15   :  { %s952_s19 = scalar_lea.hbm %s1308_s3, 8192 }
  0x16   :  { %p953_p8 = scmp.ne.s32.totalorder %s1308_s3, %s952_s19  ;;  %p956_p9 = scmp.lt.u32.totalorder %s952_s19, %s1308_s3 }
  0x18   :  { %p958_p10 = pnand %p956_p9, %p953_p8 }
  0x1a   :  { %961 = shalt.err (!%p958_p10)
}
  0x1b   :  { %s962_s26 = scalar_lea.vmem %s1169_s24, 8192  ;;  %p967_p12 = scmp.lt.s32.totalorder %s1169_s24, %s1169_s24 }
  0x1c   :  { %p963_p11 = scmp.ne.s32.totalorder %s1169_s24, %s962_s26  ;;  %p968_p13 = scmp.lt.s32.totalorder %s962_s26, %s962_s26 }
  0x1e   :  { %p969_p0 = por %p968_p13, %p967_p12 }
  0x20   :  { %p970_p1 = pnand %p969_p0, %p963_p11 }
  0x22   :  { %973 = shalt.err (!%p970_p1)
}
  0x23   :  { %s1096_s1 = smov 512   ;;  %s1097_s22 = smov 32  }
  0x24   :  { %64 = dma.hbm_to_vmem [thread:$0]  %s1308_s3, 8192, %s1169_s24, [#allocation9], %s1096_s1, %s1096_s1, %s1097_s22  }
  0x25   :  { %s1098_s29 = smov [#allocation2]   ;;  %s1099_s13 = smov [#allocation7]  }
  0x26   :  { %s29_s30 = sshll.u32 %s1098_s29, 4  ;;  %s49_s14 = sshll.u32 %s1099_s13, 4  ;;  %s30_s30 = int_to_ptr.vmem [resolvable:$true] %s29_s30  ;;  %s50_s14 = int_to_ptr.vmem [resolvable:$true] %s49_s14 }
  0x27   :  { %s974_s17 = scalar_lea.hbm %s1305_s0, 128 }
  0x28   :  { %p975_p2 = scmp.ne.s32.totalorder %s1305_s0, %s974_s17  ;;  %p978_p3 = scmp.lt.u32.totalorder %s974_s17, %s1305_s0 }
  0x2a   :  { %p980_p4 = pnand %p978_p3, %p975_p2 }
  0x2c   :  { %983 = shalt.err (!%p980_p4)
}
  0x2d   :  { %s984_s3 = scalar_lea.vmem %s30_s30, 128  ;;  %p989_p6 = scmp.lt.s32.totalorder %s30_s30, %s30_s30 }
  0x2e   :  { %p985_p5 = scmp.ne.s32.totalorder %s30_s30, %s984_s3  ;;  %p990_p7 = scmp.lt.s32.totalorder %s984_s3, %s984_s3 }
  0x30   :  { %p991_p8 = por %p990_p7, %p989_p6 }
  0x32   :  { %p992_p9 = pnand %p991_p8, %p985_p5 }
  0x34   :  { %995 = shalt.err (!%p992_p9)
}
  0x35   :  { %32 = dma.hbm_to_vmem [thread:$0]  %s1305_s0, 128, %s30_s30, [#allocation3]  }
  0x36   :  { %s996_s27 = scalar_lea.hbm %s1307_s2, 128 }
  0x37   :  { %p997_p10 = scmp.ne.s32.totalorder %s1307_s2, %s996_s27  ;;  %p1000_p11 = scmp.lt.u32.totalorder %s996_s27, %s1307_s2 }
  0x39   :  { %p1002_p12 = pnand %p1000_p11, %p997_p10 }
  0x3b   :  { %1005 = shalt.err (!%p1002_p12)
}
  0x3c   :  { %s1006_s16 = scalar_lea.vmem %s50_s14, 128  ;;  %p1011_p0 = scmp.lt.s32.totalorder %s50_s14, %s50_s14 }
  0x3d   :  { %p1007_p13 = scmp.ne.s32.totalorder %s50_s14, %s1006_s16  ;;  %p1012_p1 = scmp.lt.s32.totalorder %s1006_s16, %s1006_s16 }
  0x3f   :  { %p1013_p2 = por %p1012_p1, %p1011_p0 }
  0x41   :  { %p1014_p3 = pnand %p1013_p2, %p1007_p13 }
  0x43   :  { %1017 = shalt.err (!%p1014_p3)
}
  0x44   :  { %52 = dma.hbm_to_vmem [thread:$0]  %s1307_s2, 128, %s50_s14, [#allocation6]  }
  0x45   :  { %s1100_s17 = smov [#allocation10]   ;;  %s1018_s21 = scalar_lea.hbm %s1309_s4, 8192 }
  0x46   :  { %s70_s18 = sshll.u32 %s1100_s17, 4  ;;  %p1019_p4 = scmp.ne.s32.totalorder %s1309_s4, %s1018_s21  ;;  %s71_s18 = int_to_ptr.vmem [resolvable:$true] %s70_s18 }
  0x47   :  { %p1022_p5 = scmp.lt.u32.totalorder %s1018_s21, %s1309_s4 }
  0x49   :  { %p1024_p6 = pnand %p1022_p5, %p1019_p4 }
  0x4b   :  { %1027 = shalt.err (!%p1024_p6)
}
  0x4c   :  { %s1028_s26 = scalar_lea.vmem %s71_s18, 8192  ;;  %p1033_p8 = scmp.lt.s32.totalorder %s71_s18, %s71_s18 }
  0x4d   :  { %p1029_p7 = scmp.ne.s32.totalorder %s71_s18, %s1028_s26  ;;  %p1034_p9 = scmp.lt.s32.totalorder %s1028_s26, %s1028_s26 }
  0x4f   :  { %p1035_p10 = por %p1034_p9, %p1033_p8 }
  0x51   :  { %p1036_p11 = pnand %p1035_p10, %p1029_p7 }
  0x53   :  { %1039 = shalt.err (!%p1036_p11)
}
  0x54   :  { %76 = dma.hbm_to_vmem [thread:$0]  %s1309_s4, 8192, %s71_s18, [#allocation9], %s1096_s1, %s1096_s1, %s1097_s22  }
  0x55   :  { %1084 = dma.done.wait [#allocation3], 128  }
  0x56   :  { %1085 = vsyncadd [#allocation3], 4294967168 }
  0x57   :  { %1086 = dma.done.wait [#allocation6], 256  }
  0x58   :  { %1087 = vsyncadd [#allocation6], 4294967040 }
  0x59   :  { %1088 = dma.done.wait [#allocation9], 16384  }
  0x5a   :  { %1089 = vsyncadd [#allocation9], 4294950912  ;;  %v1101_v0 = vmov 0.0   ;;  %v108_v1 = vld [vmem:[#allocation8 + $0x8] sm:$0xff]  ;;  %v107_v3 = vld [vmem:[#allocation8] sm:$0xff]  ;;  %s1102_s16 = smov [#allocation12]  }
  0x5b   :  { %305 = vmatprep.mubr.f32.mxu0 %v1101_v0  ;;  %376 = vmatprep.mubr.f32.mxu1 %v1101_v0  ;;  %v112_v2 = vld [vmem:[#allocation8 + $0x28] sm:$0xff]  ;;  %v111_v5 = vld [vmem:[#allocation8 + $0x20] sm:$0xff]  ;;  %v110_v6 = vld [vmem:[#allocation8 + $0x18] sm:$0xff]  ;;  %s750_s0 = sshll.u32 %s1102_s16, 4  ;;  %s751_s0 = int_to_ptr.vmem [resolvable:$true] %s750_s0 }
  0x5c   :  { %v770_v4 = vpack.c.bf16 %v112_v2, %v108_v1  ;;  %v114_v7 = vld [vmem:[#allocation8 + $0x38] sm:$0xff]  ;;  %v772_v8 = vpack.c.bf16 %v111_v5, %v107_v3  ;;  %v109_v10 = vld [vmem:[#allocation8 + $0x10] sm:$0xff]  ;;  %v116_v12 = vld [vmem:[#allocation8 + $0x48] sm:$0xff]  ;;  %s1040_s30 = scalar_lea.vmem %s751_s0, 128  ;;  %p1045_p13 = scmp.lt.s32.totalorder %s751_s0, %s751_s0 }
  0x5d   :  { %v802_v9 = vpack.c.bf16 %v114_v7, %v110_v6  ;;  %v113_v11 = vld [vmem:[#allocation8 + $0x30] sm:$0xff]  ;;  %v120_v14 = vld [vmem:[#allocation8 + $0x68] sm:$0xff]  ;;  %v115_v15 = vld [vmem:[#allocation8 + $0x40] sm:$0xff]  ;;  %p1041_p12 = scmp.ne.s32.totalorder %s751_s0, %s1040_s30  ;;  %p1046_p0 = scmp.lt.s32.totalorder %s1040_s30, %s1040_s30 }
  0x5e   :  { %771 = vmatprep.subr.bf16.mxu0 %v770_v4  ;;  %v804_v13 = vpack.c.bf16 %v113_v11, %v109_v10  ;;  %v119_v16 = vld [vmem:[#allocation8 + $0x60] sm:$0xff]  ;;  %v774_v17 = vpack.c.bf16 %v120_v14, %v116_v12  ;;  %v118_v19 = vld [vmem:[#allocation8 + $0x58] sm:$0xff]  ;;  %v117_v21 = vld [vmem:[#allocation8 + $0x50] sm:$0xff] }
  0x5f   :  { %773 = vmatpush1.bf16.msra.mxu0 %v772_v8  ;;  %803 = vmatprep.subr.bf16.mxu1 %v802_v9  ;;  %v776_v18 = vpack.c.bf16 %v119_v16, %v115_v15  ;;  %v122_v20 = vld [vmem:[#allocation8 + $0x78] sm:$0xff]  ;;  %v121_v23 = vld [vmem:[#allocation8 + $0x70] sm:$0xff]  ;;  %v124_v24 = vld [vmem:[#allocation8 + $0x88] sm:$0xff]  ;;  %p1047_p1 = por %p1046_p0, %p1045_p13 }
  0x60   :  { %805 = vmatpush1.bf16.msra.mxu1 %v804_v13  ;;  %v806_v22 = vpack.c.bf16 %v122_v20, %v118_v19  ;;  %v128_v25 = vld [vmem:[#allocation8 + $0xa8] sm:$0xff]  ;;  %775 = vmatprep.subr.bf16.mxu0 %v774_v17  ;;  %v808_v26 = vpack.c.bf16 %v121_v23, %v117_v21  ;;  %v123_v28 = vld [vmem:[#allocation8 + $0x80] sm:$0xff]  ;;  %v126_v30 = vld [vmem:[#allocation8 + $0x98] sm:$0xff] }
  0x61   :  { %v778_v27 = vpack.c.bf16 %v128_v25, %v124_v24  ;;  %v127_v29 = vld [vmem:[#allocation8 + $0xa0] sm:$0xff]  ;;  %v130_v31 = vld [vmem:[#allocation8 + $0xb8] sm:$0xff]  ;;  %v125_v32 = vld [vmem:[#allocation8 + $0x90] sm:$0xff]  ;;  %p1048_p2 = pnand %p1047_p1, %p1041_p12 }
  0x62   :  { %807 = vmatprep.subr.bf16.mxu1 %v806_v22  ;;  %v129_v33 = vld [vmem:[#allocation8 + $0xb0] sm:$0xff]  ;;  %v780_v34 = vpack.c.bf16 %v127_v29, %v123_v28  ;;  %v810_v35 = vpack.c.bf16 %v130_v31, %v126_v30  ;;  %v132_v36 = vld [vmem:[#allocation8 + $0xc8] sm:$0xff]  ;;  %v131_v38 = vld [vmem:[#allocation8 + $0xc0] sm:$0xff] }
  0x63   :  { %777 = vmatpush1.bf16.msra.mxu0 %v776_v18  ;;  %v136_v37 = vld [vmem:[#allocation8 + $0xe8] sm:$0xff]  ;;  %v812_v39 = vpack.c.bf16 %v129_v33, %v125_v32  ;;  %v135_v41 = vld [vmem:[#allocation8 + $0xe0] sm:$0xff]  ;;  %v134_v42 = vld [vmem:[#allocation8 + $0xd8] sm:$0xff] }
  0x64   :  { %809 = vmatpush1.bf16.msra.mxu1 %v808_v26  ;;  %779 = vmatprep.subr.bf16.mxu0 %v778_v27  ;;  %v782_v40 = vpack.c.bf16 %v136_v37, %v132_v36  ;;  %v138_v43 = vld [vmem:[#allocation8 + $0xf8] sm:$0xff]  ;;  %v133_v45 = vld [vmem:[#allocation8 + $0xd0] sm:$0xff]  ;;  %v140_v47 = vld [vmem:[#allocation8 + $0x108] sm:$0xff]  ;;  %v784_v49 = vpack.c.bf16 %v135_v41, %v131_v38 }
  0x65   :  { %811 = vmatprep.subr.bf16.mxu1 %v810_v35  ;;  %v814_v44 = vpack.c.bf16 %v138_v43, %v134_v42  ;;  %v137_v46 = vld [vmem:[#allocation8 + $0xf0] sm:$0xff]  ;;  %v144_v48 = vld [vmem:[#allocation8 + $0x128] sm:$0xff]  ;;  %v142_v50 = vld [vmem:[#allocation8 + $0x118] sm:$0xff] }
  0x66   :  { %v146_v51 = vld [vmem:[#allocation8 + $0x138] sm:$0xff]  ;;  %v816_v52 = vpack.c.bf16 %v137_v46, %v133_v45  ;;  %v786_v53 = vpack.c.bf16 %v144_v48, %v140_v47  ;;  %v139_v54 = vld [vmem:[#allocation8 + $0x100] sm:$0xff]  ;;  %v141_v56 = vld [vmem:[#allocation8 + $0x110] sm:$0xff] }
  0x67   :  { %781 = vmatpush1.bf16.msra.mxu0 %v780_v34  ;;  %v143_v55 = vld [vmem:[#allocation8 + $0x120] sm:$0xff]  ;;  %v818_v57 = vpack.c.bf16 %v146_v51, %v142_v50  ;;  %v145_v58 = vld [vmem:[#allocation8 + $0x130] sm:$0xff]  ;;  %v148_v59 = vld [vmem:[#allocation8 + $0x148] sm:$0xff] }
  0x68   :  { %813 = vmatpush1.bf16.msra.mxu1 %v812_v39  ;;  %783 = vmatprep.subr.bf16.mxu0 %v782_v40  ;;  %v152_v60 = vld [vmem:[#allocation8 + $0x168] sm:$0xff]  ;;  %v150_v61 = vld [vmem:[#allocation8 + $0x158] sm:$0xff]  ;;  %v788_v63 = vpack.c.bf16 %v143_v55, %v139_v54  ;;  %v820_v1 = vpack.c.bf16 %v145_v58, %v141_v56  ;;  %v147_v3 = vld [vmem:[#allocation8 + $0x140] sm:$0xff] }
  0x69   :  { %815 = vmatprep.subr.bf16.mxu1 %v814_v44  ;;  %v154_v62 = vld [vmem:[#allocation8 + $0x178] sm:$0xff]  ;;  %v790_v2 = vpack.c.bf16 %v152_v60, %v148_v59  ;;  %v151_v4 = vld [vmem:[#allocation8 + $0x160] sm:$0xff]  ;;  %v149_v5 = vld [vmem:[#allocation8 + $0x150] sm:$0xff] }
  0x6a   :  { %v822_v6 = vpack.c.bf16 %v154_v62, %v150_v61  ;;  %v153_v7 = vld [vmem:[#allocation8 + $0x170] sm:$0xff]  ;;  %v156_v8 = vld [vmem:[#allocation8 + $0x188] sm:$0xff]  ;;  %v158_v10 = vld [vmem:[#allocation8 + $0x198] sm:$0xff]  ;;  %v792_v12 = vpack.c.bf16 %v151_v4, %v147_v3 }
  0x6b   :  { %785 = vmatpush1.bf16.msra.mxu0 %v784_v49  ;;  %v160_v9 = vld [vmem:[#allocation8 + $0x1a8] sm:$0xff]  ;;  %v162_v11 = vld [vmem:[#allocation8 + $0x1b8] sm:$0xff]  ;;  %v824_v13 = vpack.c.bf16 %v153_v7, %v149_v5  ;;  %v155_v15 = vld [vmem:[#allocation8 + $0x180] sm:$0xff] }
  0x6c   :  { %817 = vmatpush1.bf16.msra.mxu1 %v816_v52  ;;  %787 = vmatprep.subr.bf16.mxu0 %v786_v53  ;;  %v794_v14 = vpack.c.bf16 %v160_v9, %v156_v8  ;;  %v159_v16 = vld [vmem:[#allocation8 + $0x1a0] sm:$0xff]  ;;  %v157_v17 = vld [vmem:[#allocation8 + $0x190] sm:$0xff]  ;;  %v826_v18 = vpack.c.bf16 %v162_v11, %v158_v10  ;;  %v164_v20 = vld [vmem:[#allocation8 + $0x1c8] sm:$0xff] }
  0x6d   :  { %819 = vmatprep.subr.bf16.mxu1 %v818_v57  ;;  %v161_v19 = vld [vmem:[#allocation8 + $0x1b0] sm:$0xff]  ;;  %v168_v21 = vld [vmem:[#allocation8 + $0x1e8] sm:$0xff]  ;;  %v166_v22 = vld [vmem:[#allocation8 + $0x1d8] sm:$0xff]  ;;  %v796_v24 = vpack.c.bf16 %v159_v16, %v155_v15 }
  0x6e   :  { %v170_v23 = vld [vmem:[#allocation8 + $0x1f8] sm:$0xff]  ;;  %v828_v25 = vpack.c.bf16 %v161_v19, %v157_v17  ;;  %v798_v26 = vpack.c.bf16 %v168_v21, %v164_v20  ;;  %v163_v27 = vld [vmem:[#allocation8 + $0x1c0] sm:$0xff]  ;;  %v165_v29 = vld [vmem:[#allocation8 + $0x1d0] sm:$0xff] }
  0x6f   :  { %789 = vmatpush1.bf16.msra.mxu0 %v788_v63  ;;  %v167_v28 = vld [vmem:[#allocation8 + $0x1e0] sm:$0xff]  ;;  %v830_v30 = vpack.c.bf16 %v170_v23, %v166_v22  ;;  %v169_v31 = vld [vmem:[#allocation8 + $0x1f0] sm:$0xff]  ;;  %v172_v32 = vld [vmem:[#allocation10 + $0x8] sm:$0xff] }
  0x70   :  { %821 = vmatpush1.bf16.msra.mxu1 %v820_v1  ;;  %791 = vmatprep.subr.bf16.mxu0 %v790_v2  ;;  %v176_v33 = vld [vmem:[#allocation10 + $0x28] sm:$0xff]  ;;  %v174_v34 = vld [vmem:[#allocation10 + $0x18] sm:$0xff]  ;;  %v800_v36 = vpack.c.bf16 %v167_v28, %v163_v27  ;;  %v832_v37 = vpack.c.bf16 %v169_v31, %v165_v29  ;;  %v171_v39 = vld [vmem:[#allocation10] sm:$0xff] }
  0x71   :  { %823 = vmatprep.subr.bf16.mxu1 %v822_v6  ;;  %v178_v35 = vld [vmem:[#allocation10 + $0x38] sm:$0xff]  ;;  %v834_v38 = vpack.c.bf16 %v176_v33, %v172_v32  ;;  %v175_v40 = vld [vmem:[#allocation10 + $0x20] sm:$0xff]  ;;  %v173_v41 = vld [vmem:[#allocation10 + $0x10] sm:$0xff] }
  0x72   :  { %v866_v42 = vpack.c.bf16 %v178_v35, %v174_v34  ;;  %v177_v43 = vld [vmem:[#allocation10 + $0x30] sm:$0xff]  ;;  %v180_v44 = vld [vmem:[#allocation10 + $0x48] sm:$0xff]  ;;  %v182_v46 = vld [vmem:[#allocation10 + $0x58] sm:$0xff]  ;;  %v836_v49 = vpack.c.bf16 %v175_v40, %v171_v39 }
  0x73   :  { %793 = vmatpush1.bf16.msra.mxu0 %v792_v12  ;;  %v184_v45 = vld [vmem:[#allocation10 + $0x68] sm:$0xff]  ;;  %v186_v47 = vld [vmem:[#allocation10 + $0x78] sm:$0xff]  ;;  %v868_v50 = vpack.c.bf16 %v177_v43, %v173_v41  ;;  %v179_v52 = vld [vmem:[#allocation10 + $0x40] sm:$0xff] }
  0x74   :  { %825 = vmatpush1.bf16.msra.mxu1 %v824_v13  ;;  %795 = vmatprep.subr.bf16.mxu0 %v794_v14  ;;  %v104_v48 = vld [vmem:[#allocation2] sm:$0xff]  ;;  %v838_v51 = vpack.c.bf16 %v184_v45, %v180_v44  ;;  %v183_v53 = vld [vmem:[#allocation10 + $0x60] sm:$0xff]  ;;  %v181_v54 = vld [vmem:[#allocation10 + $0x50] sm:$0xff]  ;;  %v870_v55 = vpack.c.bf16 %v186_v47, %v182_v46 }
  0x75   :  { %827 = vmatprep.subr.bf16.mxu1 %v826_v18  ;;  %v185_v56 = vld [vmem:[#allocation10 + $0x70] sm:$0xff]  ;;  %v188_v57 = vld [vmem:[#allocation10 + $0x88] sm:$0xff]  ;;  %v190_v59 = vld [vmem:[#allocation10 + $0x98] sm:$0xff]  ;;  %v840_v61 = vpack.c.bf16 %v183_v53, %v179_v52 }
  0x76   :  { %v192_v58 = vld [vmem:[#allocation10 + $0xa8] sm:$0xff]  ;;  %v194_v60 = vld [vmem:[#allocation10 + $0xb8] sm:$0xff]  ;;  %v872_v62 = vpack.c.bf16 %v185_v56, %v181_v54  ;;  %v187_v1 = vld [vmem:[#allocation10 + $0x80] sm:$0xff] }
  0x77   :  { %797 = vmatpush1.bf16.msra.mxu0 %v796_v24  ;;  %v842_v63 = vpack.c.bf16 %v192_v58, %v188_v57  ;;  %v191_v2 = vld [vmem:[#allocation10 + $0xa0] sm:$0xff]  ;;  %v189_v3 = vld [vmem:[#allocation10 + $0x90] sm:$0xff]  ;;  %v874_v4 = vpack.c.bf16 %v194_v60, %v190_v59  ;;  %v196_v6 = vld [vmem:[#allocation10 + $0xc8] sm:$0xff] }
  0x78   :  { %829 = vmatpush1.bf16.msra.mxu1 %v828_v25  ;;  %799 = vmatprep.subr.bf16.mxu0 %v798_v26  ;;  %v193_v5 = vld [vmem:[#allocation10 + $0xb0] sm:$0xff]  ;;  %v200_v7 = vld [vmem:[#allocation10 + $0xe8] sm:$0xff]  ;;  %v198_v8 = vld [vmem:[#allocation10 + $0xd8] sm:$0xff]  ;;  %v844_v10 = vpack.c.bf16 %v191_v2, %v187_v1 }
  0x79   :  { %831 = vmatprep.subr.bf16.mxu1 %v830_v30  ;;  %v202_v9 = vld [vmem:[#allocation10 + $0xf8] sm:$0xff]  ;;  %v876_v11 = vpack.c.bf16 %v193_v5, %v189_v3  ;;  %v846_v12 = vpack.c.bf16 %v200_v7, %v196_v6  ;;  %v195_v13 = vld [vmem:[#allocation10 + $0xc0] sm:$0xff]  ;;  %v197_v15 = vld [vmem:[#allocation10 + $0xd0] sm:$0xff] }
  0x7a   :  { %v199_v14 = vld [vmem:[#allocation10 + $0xe0] sm:$0xff]  ;;  %v878_v16 = vpack.c.bf16 %v202_v9, %v198_v8  ;;  %v201_v17 = vld [vmem:[#allocation10 + $0xf0] sm:$0xff]  ;;  %v204_v18 = vld [vmem:[#allocation10 + $0x108] sm:$0xff] }
  0x7b   :  { %801 = vmatpush1.bf16.msra.mxu0 %v800_v36  ;;  %v208_v19 = vld [vmem:[#allocation10 + $0x128] sm:$0xff]  ;;  %v206_v20 = vld [vmem:[#allocation10 + $0x118] sm:$0xff]  ;;  %v848_v22 = vpack.c.bf16 %v199_v14, %v195_v13  ;;  %v203_v24 = vld [vmem:[#allocation10 + $0x100] sm:$0xff] }
  0x7c   :  { %833 = vmatpush1.bf16.msra.mxu1 %v832_v37  ;;  %835 = vmatprep.subr.bf16.mxu0 %v834_v38  ;;  %v210_v21 = vld [vmem:[#allocation10 + $0x138] sm:$0xff]  ;;  %v850_v23 = vpack.c.bf16 %v208_v19, %v204_v18  ;;  %v207_v25 = vld [vmem:[#allocation10 + $0x120] sm:$0xff]  ;;  %v205_v26 = vld [vmem:[#allocation10 + $0x110] sm:$0xff] }
  0x7d   :  { %867 = vmatprep.subr.bf16.mxu1 %v866_v42  ;;  %v882_v27 = vpack.c.bf16 %v210_v21, %v206_v20  ;;  %v209_v28 = vld [vmem:[#allocation10 + $0x130] sm:$0xff]  ;;  %v212_v29 = vld [vmem:[#allocation10 + $0x148] sm:$0xff]  ;;  %v214_v31 = vld [vmem:[#allocation10 + $0x158] sm:$0xff]  ;;  %v852_v33 = vpack.c.bf16 %v207_v25, %v203_v24 }
  0x7e   :  { %306 = vmatmul.mubr.f32.vlgmr.msra.gmra.mrb[0].mxu0 %v104_v48  ;;  %v216_v30 = vld [vmem:[#allocation10 + $0x168] sm:$0xff]  ;;  %v218_v32 = vld [vmem:[#allocation10 + $0x178] sm:$0xff]  ;;  %v884_v34 = vpack.c.bf16 %v209_v28, %v205_v26  ;;  %v211_v36 = vld [vmem:[#allocation10 + $0x140] sm:$0xff] }
  0x7f   :  { %837 = vmatpush1.bf16.msra.mxu0 %v836_v49  ;;  %377 = vmatmul.mubr.f32.vlgmr.msra.gmra.mrb[0].mxu1 %v104_v48  ;;  %v854_v35 = vpack.c.bf16 %v216_v30, %v212_v29  ;;  %v215_v37 = vld [vmem:[#allocation10 + $0x160] sm:$0xff]  ;;  %v213_v38 = vld [vmem:[#allocation10 + $0x150] sm:$0xff]  ;;  %v886_v39 = vpack.c.bf16 %v218_v32, %v214_v31  ;;  %v220_v41 = vld [vmem:[#allocation10 + $0x188] sm:$0xff] }
  0x80   :  { %869 = vmatpush1.bf16.msra.mxu1 %v868_v50  ;;  %839 = vmatprep.subr.bf16.mxu0 %v838_v51  ;;  %v217_v40 = vld [vmem:[#allocation10 + $0x170] sm:$0xff]  ;;  %v224_v42 = vld [vmem:[#allocation10 + $0x1a8] sm:$0xff]  ;;  %v222_v43 = vld [vmem:[#allocation10 + $0x198] sm:$0xff]  ;;  %v856_v45 = vpack.c.bf16 %v215_v37, %v211_v36  ;;  %v553_v36 = vlaneseq }
  0x81   :  { %871 = vmatprep.subr.bf16.mxu1 %v870_v55  ;;  %447 = vmatprep.mubr.f32.mxu0 %v1101_v0  ;;  %v226_v44 = vld [vmem:[#allocation10 + $0x1b8] sm:$0xff]  ;;  %v888_v46 = vpack.c.bf16 %v217_v40, %v213_v38  ;;  %v858_v47 = vpack.c.bf16 %v224_v42, %v220_v41  ;;  %v219_v48 = vld [vmem:[#allocation10 + $0x180] sm:$0xff]  ;;  %v221_v50 = vld [vmem:[#allocation10 + $0x190] sm:$0xff] }
  0x82   :  { %518 = vmatprep.mubr.f32.mxu1 %v1101_v0  ;;  %v880_v0 = vpack.c.bf16 %v201_v17, %v197_v15  ;;  %v223_v49 = vld [vmem:[#allocation10 + $0x1a0] sm:$0xff]  ;;  %v890_v51 = vpack.c.bf16 %v226_v44, %v222_v43  ;;  %v225_v52 = vld [vmem:[#allocation10 + $0x1b0] sm:$0xff]  ;;  %v228_v53 = vld [vmem:[#allocation10 + $0x1c8] sm:$0xff]  ;;  %v554_v40 = vshrl.u32 %v553_v36, 7 }
  0x83   :  { %841 = vmatpush1.bf16.msra.mxu0 %v840_v61  ;;  %v232_v54 = vld [vmem:[#allocation10 + $0x1e8] sm:$0xff]  ;;  %v230_v55 = vld [vmem:[#allocation10 + $0x1d8] sm:$0xff]  ;;  %v860_v57 = vpack.c.bf16 %v223_v49, %v219_v48  ;;  %v892_v58 = vpack.c.bf16 %v225_v52, %v221_v50  ;;  %v227_v60 = vld [vmem:[#allocation10 + $0x1c0] sm:$0xff] }
  0x84   :  { %873 = vmatpush1.bf16.msra.mxu1 %v872_v62  ;;  %843 = vmatprep.subr.bf16.mxu0 %v842_v63  ;;  %v234_v56 = vld [vmem:[#allocation10 + $0x1f8] sm:$0xff]  ;;  %v862_v59 = vpack.c.bf16 %v232_v54, %v228_v53  ;;  %v231_v61 = vld [vmem:[#allocation10 + $0x1e0] sm:$0xff]  ;;  %v229_v63 = vld [vmem:[#allocation10 + $0x1d0] sm:$0xff] }
  0x85   :  { %875 = vmatprep.subr.bf16.mxu1 %v874_v4  ;;  %v894_v62 = vpack.c.bf16 %v234_v56, %v230_v55  ;;  %v233_v1 = vld [vmem:[#allocation10 + $0x1f0] sm:$0xff]  ;;  %v864_v2 = vpack.c.bf16 %v231_v61, %v227_v60  ;;  %v1258_v48 = vld [vmem:[%s1311_s6] sm:$0xf] }
  0x86   :  { %v896_v3 = vpack.c.bf16 %v233_v1, %v229_v63  ;;  %v105_v4 = vld [vmem:[#allocation5] sm:$0xff]  ;;  %v238_v52 = vld [vmem:[%s1313_s8] sm:$0xf] }
  0x87   :  { %845 = vmatpush1.bf16.msra.mxu0 %v844_v10 }
  0x88   :  { %877 = vmatpush1.bf16.msra.mxu1 %v876_v11  ;;  %847 = vmatprep.subr.bf16.mxu0 %v846_v12 }
  0x89   :  { %879 = vmatprep.subr.bf16.mxu1 %v878_v16 }
  0x8b   :  { %849 = vmatpush1.bf16.msra.mxu0 %v848_v22 }
  0x8c   :  { %881 = vmatpush1.bf16.msra.mxu1 %v880_v0  ;;  %851 = vmatprep.subr.bf16.mxu0 %v850_v23 }
  0x8d   :  { %883 = vmatprep.subr.bf16.mxu1 %v882_v27 }
  0x8f   :  { %853 = vmatpush1.bf16.msra.mxu0 %v852_v33 }
  0x90   :  { %885 = vmatpush1.bf16.msra.mxu1 %v884_v34  ;;  %855 = vmatprep.subr.bf16.mxu0 %v854_v35 }
  0x91   :  { %887 = vmatprep.subr.bf16.mxu1 %v886_v39 }
  0x93   :  { %857 = vmatpush1.bf16.msra.mxu0 %v856_v45  ;;  %v1253_v45 = vld [vmem:[%s1310_s5] sm:$0xf] }
  0x94   :  { %889 = vmatpush1.bf16.msra.mxu1 %v888_v46  ;;  %859 = vmatprep.subr.bf16.mxu0 %v858_v47  ;;  %v567_v46 = vsub.s32 3, %v554_v40 }
  0x95   :  { %891 = vmatprep.subr.bf16.mxu1 %v890_v51  ;;  %v237_v51 = vld [vmem:[%s1312_s7] sm:$0xf] }
  0x96   :  { %v568_v49 = vrot.slane %v1253_v45, %v567_v46  ;;  %v593_v50 = vrot.slane %v1258_v48, %v567_v46  ;;  %v644_v53 = vrot.slane %v237_v51, %v567_v46  ;;  %v669_v54 = vrot.slane %v238_v52, %v567_v46 }
  0x97   :  { %861 = vmatpush1.bf16.msra.mxu0 %v860_v57 }
  0x98   :  { %893 = vmatpush1.bf16.msra.mxu1 %v892_v58  ;;  %863 = vmatprep.subr.bf16.mxu0 %v862_v59 }
  0x99   :  { %895 = vmatprep.subr.bf16.mxu1 %v894_v62 }
  0x9b   :  { %865 = vmatpush1.bf16.msra.mxu0 %v864_v2  ;;  %v555_v2 = vsub.s32 0, %v554_v40 }
  0x9c   :  { %897 = vmatpush1.bf16.msra.mxu1 %v896_v3  ;;  %v559_v3 = vsub.s32 1, %v554_v40 }
  0x9e   :  { %448 = vmatmul.mubr.f32.vlgmr.msra.gmra.mrb[2].mxu0 %v105_v4 }
  0x9f   :  { %519 = vmatmul.mubr.f32.vlgmr.msra.gmra.mrb[2].mxu1 %v105_v4 }
 0x151   :  { %v307_v5 = vpop.f32.mrb[0].mxu0 }
 0x152   :  { %v309_v6 = vpop.f32.mrb[1].mxu0  ;;  %v378_v7 = vpop.f32.mrb[0].mxu1 }
 0x153   :  { %v525_v8 = vadd.f32 %v309_v6, %v307_v5  ;;  %v380_v9 = vpop.f32.mrb[1].mxu1 }
 0x155   :  { %v526_v10 = vadd.f32 %v525_v8, %v378_v7  ;;  %v581_v8 = vrot.slane %v1258_v48, %v555_v2 }
 0x157   :  { %v527_v11 = vadd.f32 %v526_v10, %v380_v9  ;;  %v636_v10 = vrot.slane %v237_v51, %v559_v3 }
 0x159   :  { %528 = vadd.xlane.f32.xlu0 %v527_v11 }
 0x171   :  { %v449_v12 = vpop.f32.mrb[2].mxu0 }
 0x172   :  { %v451_v13 = vpop.f32.mrb[3].mxu0  ;;  %v520_v14 = vpop.f32.mrb[2].mxu1 }
 0x173   :  { %v602_v15 = vadd.f32 %v451_v13, %v449_v12  ;;  %v522_v16 = vpop.f32.mrb[3].mxu1 }
 0x175   :  { %v603_v17 = vadd.f32 %v602_v15, %v520_v14  ;;  %v661_v15 = vrot.slane %v238_v52, %v559_v3 }
 0x177   :  { %v604_v18 = vadd.f32 %v603_v17, %v522_v16 }
 0x179   :  { %605 = vadd.xlane.f32.xlu0 %v604_v18 }
 0x1e6   :  { %v529_v19 = vpop.xlane.xlu0 %528 }
 0x1e7   :  { %v531_v20 = vmul.f32 0.001953125, %v529_v19 }
 0x1e9   :  { %v532_v21 = vsub.f32 %v307_v5, %v531_v20  ;;  %v533_v22 = vsub.f32 %v309_v6, %v531_v20  ;;  %v1246_v0 = vsub.f32 %v378_v7, %v531_v20  ;;  %v535_v23 = vsub.f32 %v380_v9, %v531_v20 }
 0x1ea   :  { %v556_v5 = vrot.slane %v1253_v45, %v555_v2  ;;  %v560_v7 = vrot.slane %v1253_v45, %v559_v3  ;;  %v632_v9 = vrot.slane %v237_v51, %v555_v2 }
 0x1eb   :  { %v536_v24 = vmul.f32 %v532_v21, %v532_v21  ;;  %v537_v25 = vmul.f32 %v533_v22, %v533_v22  ;;  %v538_v26 = vmul.f32 %v1246_v0, %v1246_v0  ;;  %v539_v28 = vmul.f32 %v535_v23, %v535_v23 }
 0x1ed   :  { %v540_v27 = vadd.f32 %v537_v25, %v536_v24 }
 0x1ef   :  { %v541_v29 = vadd.f32 %v540_v27, %v538_v26 }
 0x1f1   :  { %v542_v30 = vadd.f32 %v541_v29, %v539_v28 }
 0x1f3   :  { %543 = vadd.xlane.f32.xlu1 %v542_v30 }
 0x206   :  { %v606_v31 = vpop.xlane.xlu0 %605 }
 0x207   :  { %v607_v32 = vmul.f32 0.001953125, %v606_v31 }
 0x209   :  { %v608_v33 = vsub.f32 %v449_v12, %v607_v32  ;;  %v609_v34 = vsub.f32 %v451_v13, %v607_v32  ;;  %v610_v35 = vsub.f32 %v520_v14, %v607_v32  ;;  %v611_v37 = vsub.f32 %v522_v16, %v607_v32 }
 0x20a   :  { %v585_v13 = vrot.slane %v1258_v48, %v559_v3  ;;  %v657_v14 = vrot.slane %v238_v52, %v555_v2  ;;  %v768_v2 = vld [vmem:[%s1314_s9] ss:$0 sm:$0xff] }
 0x20b   :  { %v612_v38 = vmul.f32 %v608_v33, %v608_v33  ;;  %v613_v39 = vmul.f32 %v609_v34, %v609_v34  ;;  %v614_v41 = vmul.f32 %v610_v35, %v610_v35  ;;  %v615_v43 = vmul.f32 %v611_v37, %v611_v37 }
 0x20d   :  { %v616_v42 = vadd.f32 %v613_v39, %v612_v38 }
 0x20f   :  { %v617_v44 = vadd.f32 %v616_v42, %v614_v41 }
 0x211   :  { %v618_v47 = vadd.f32 %v617_v44, %v615_v43 }
 0x213   :  { %619 = vadd.xlane.f32.xlu1 %v618_v47 }
 0x280   :  { %v544_v55 = vpop.xlane.xlu1 %543 }
 0x281   :  { %v545_v56 = vmul.f32 0.001953125, %v544_v55 }
 0x283   :  { %v546_v57 = vadd.f32 1e-05, %v545_v56 }
 0x285   :  { %908 = vrsqrt.f32 %v546_v57 }
 0x28f   :  { %v909_v58 = vpop.eup %908 }
 0x290   :  { %v551_v59 = vmul.f32 %v909_v58, %v535_v23  ;;  %v548_v4 = vmul.f32 %v909_v58, %v532_v21  ;;  %v549_v6 = vmul.f32 %v909_v58, %v533_v22  ;;  %v563_v22 = vsub.s32 2, %v554_v40 }
 0x291   :  { %v550_v38 = vmul.f32 %v909_v58, %v1246_v0 }
 0x292   :  { %v576_v60 = vmul.f32 %v568_v49, %v551_v59  ;;  %v573_v12 = vmul.f32 %v556_v5, %v548_v4  ;;  %v574_v16 = vmul.f32 %v560_v7, %v549_v6  ;;  %v640_v29 = vrot.slane %v237_v51, %v563_v22  ;;  %v769_v4 = vld [vmem:[%s1315_s10] ss:$0 sm:$0xff] }
 0x293   :  { %v665_v41 = vrot.slane %v238_v52, %v563_v22  ;;  %v589_v42 = vrot.slane %v1258_v48, %v563_v22 }
 0x294   :  { %v601_v61 = vadd.f32 %v593_v50, %v576_v60  ;;  %v598_v24 = vadd.f32 %v581_v8, %v573_v12  ;;  %v599_v25 = vadd.f32 %v585_v13, %v574_v16 }
 0x2a0   :  { %v620_v62 = vpop.xlane.xlu1 %619 }
 0x2a1   :  { %v621_v63 = vmul.f32 0.001953125, %v620_v62 }
 0x2a3   :  { %v622_v1 = vadd.f32 1e-05, %v621_v63 }
 0x2a5   :  { %910 = vrsqrt.f32 %v622_v1 }
 0x2af   :  { %v911_v11 = vpop.eup %910 }
 0x2b0   :  { %v624_v17 = vmul.f32 %v911_v11, %v608_v33  ;;  %v625_v18 = vmul.f32 %v911_v11, %v609_v34  ;;  %v627_v19 = vmul.f32 %v911_v11, %v611_v37  ;;  %v626_v30 = vmul.f32 %v911_v11, %v610_v35 }
 0x2b1   :  { %v564_v33 = vrot.slane %v1253_v45, %v563_v22  ;;  %v106_v45 = vld [vmem:[#allocation7] sm:$0xff] }
 0x2b2   :  { %v649_v20 = vmul.f32 %v632_v9, %v624_v17  ;;  %v650_v21 = vmul.f32 %v636_v10, %v625_v18  ;;  %v652_v23 = vmul.f32 %v644_v53, %v627_v19  ;;  %v651_v39 = vmul.f32 %v640_v29, %v626_v30 }
 0x2b3   :  { %v575_v40 = vmul.f32 %v564_v33, %v550_v38 }
 0x2b4   :  { %v674_v26 = vadd.f32 %v657_v14, %v649_v20  ;;  %v675_v27 = vadd.f32 %v661_v15, %v650_v21  ;;  %v677_v28 = vadd.f32 %v669_v54, %v652_v23  ;;  %v676_v43 = vadd.f32 %v665_v41, %v651_v39 }
 0x2b5   :  { %v600_v44 = vadd.f32 %v589_v42, %v575_v40 }
 0x2b6   :  { %v678_v31 = vadd.f32 %v674_v26, %v598_v24  ;;  %v679_v32 = vadd.f32 %v675_v27, %v599_v25  ;;  %v681_v36 = vadd.f32 %v677_v28, %v601_v61 }
 0x2b7   :  { %v680_v46 = vadd.f32 %v676_v43, %v600_v44 }
 0x2b8   :  { %v765_v34 = vmul.f32 -1.442695, %v678_v31  ;;  %v766_v37 = vmul.f32 -1.442695, %v679_v32  ;;  %v767_v60 = vmul.f32 -1.442695, %v681_v36 }
 0x2ba   :  { %912 = vpow2.f32 %v765_v34 }
 0x2bb   :  { %914 = vpow2.f32 %v766_v37 }
 0x2bc   :  { %916 = vtanh.f32 %v680_v46 }
 0x2c4   :  { %v913_v35 = vpop.eup %912 }
 0x2c5   :  { %v915_v47 = vpop.eup %914  ;;  %v685_v49 = vadd.f32 1.0, %v913_v35 }
 0x2c6   :  { %v691_v50 = vadd.f32 1.0, %v915_v47  ;;  %v917_v0 = vpop.eup %916 }
 0x2c7   :  { %918 = vrcp.f32 %v685_v49 }
 0x2c8   :  { %920 = vrcp.f32 %v691_v50 }
 0x2c9   :  { %922 = vpow2.f32 %v767_v60 }
 0x2d1   :  { %v919_v51 = vpop.eup %918 }
 0x2d2   :  { %v921_v53 = vpop.eup %920  ;;  %v702_v52 = vmul.f32 %v919_v51, %v917_v0 }
 0x2d3   :  { %v701_v54 = vmul.f32 %v921_v53, %v106_v45  ;;  %v923_v63 = vpop.eup %922 }
 0x2d4   :  { %v698_v5 = vadd.f32 1.0, %v923_v63 }
 0x2d5   :  { %v703_v55 = vadd.f32 %v702_v52, %v701_v54 }
 0x2d7   :  { %704 = vadd.xlane.f32.xlu0 %v703_v55 }
 0x364   :  { %v705_v56 = vpop.xlane.xlu0 %704 }
 0x365   :  { %v707_v48 = vmul.f32 0.0078125, %v705_v56 }
 0x367   :  { %v708_v57 = vsub.f32 %v703_v55, %v707_v48 }
 0x369   :  { %v709_v58 = vmul.f32 %v708_v57, %v708_v57 }
 0x36b   :  { %710 = vadd.xlane.f32.xlu1 %v709_v58 }
 0x3f8   :  { %v711_v59 = vpop.xlane.xlu1 %710 }
 0x3f9   :  { %v712_v61 = vmul.f32 0.0078125, %v711_v59 }
 0x3fb   :  { %v713_v62 = vadd.f32 1e-05, %v712_v61 }
 0x3fd   :  { %924 = vrsqrt.f32 %v713_v62 }
 0x3fe   :  { %926 = vrcp.f32 %v698_v5 }
 0x407   :  { %v925_v1 = vpop.eup %924 }
 0x408   :  { %v715_v3 = vmul.f32 %v925_v1, %v708_v57 }
 0x40a   :  { %v722_v6 = vmul.f32 %v768_v2, %v715_v3 }
 0x40c   :  { %v729_v7 = vadd.f32 %v769_v4, %v722_v6 }
 0x40e   :  { %733 = vst [vmem:[#allocation12] sm:$0xff] %v729_v7  ;;  %928 = vtanh.f32 %v729_v7 }
 0x40f   :  { %1051 = shalt.err (!%p1048_p2)
}
 0x410   :  { %s1052_s10 = scalar_lea.hbm %s1317_s12, 128 }
 0x411   :  { %p1053_p3 = scmp.ne.s32.totalorder %s1317_s12, %s1052_s10  ;;  %p1056_p4 = scmp.lt.u32.totalorder %s1052_s10, %s1317_s12 }
 0x413   :  { %p1058_p5 = pnand %p1056_p4, %p1053_p3 }
 0x415   :  { %1061 = shalt.err (!%p1058_p5)
}
 0x416   :  { %753 = dma.vmem_to_hbm [thread:$0]  %s751_s0, 128, %s1317_s12, [#allocation13]   ;;  %v927_v8 = vpop.eup %926 }
 0x417   :  { %s1103_s23 = smov [#allocation11]  }
 0x418   :  { %s740_s25 = sshll.u32 %s1103_s23, 4  ;;  %v929_v9 = vpop.eup %928  ;;  %s741_s25 = int_to_ptr.vmem [resolvable:$true] %s740_s25 }
 0x419   :  { %v731_v10 = vmul.f32 %v929_v9, %v927_v8  ;;  %s1062_s26 = scalar_lea.vmem %s741_s25, 128  ;;  %p1067_p7 = scmp.lt.s32.totalorder %s741_s25, %s741_s25 }
 0x41a   :  { %p1063_p6 = scmp.ne.s32.totalorder %s741_s25, %s1062_s26  ;;  %p1068_p8 = scmp.lt.s32.totalorder %s1062_s26, %s1062_s26 }
 0x41b   :  { %732 = vst [vmem:[#allocation11] sm:$0xff] %v731_v10 }
 0x41c   :  { %p1069_p9 = por %p1068_p8, %p1067_p7 }
 0x41e   :  { %p1070_p10 = pnand %p1069_p9, %p1063_p6 }
 0x420   :  { %1073 = shalt.err (!%p1070_p10)
}
 0x421   :  { %s1074_s4 = scalar_lea.hbm %s1316_s11, 128 }
 0x422   :  { %p1075_p11 = scmp.ne.s32.totalorder %s1316_s11, %s1074_s4  ;;  %p1078_p12 = scmp.lt.u32.totalorder %s1074_s4, %s1316_s11 }
 0x424   :  { %p1080_p13 = pnand %p1078_p12, %p1075_p11 }
 0x426   :  { %1083 = shalt.err (!%p1080_p13)
}
 0x427   :  { %743 = dma.vmem_to_hbm [thread:$0]  %s741_s25, 128, %s1316_s11, [#allocation4]  }
 0x428   :  { %1090 = dma.done.wait [#allocation4], 128  }
 0x429   :  { %1091 = vsyncadd [#allocation4], 4294967168 }
 0x42a   :  { %1092 = dma.done.wait [#allocation13], 128  }
 0x42b   :  { %1093 = vsyncadd [#allocation13], 4294967168 }
 0x42c   :  { %760 = vsyncpa [#allocation3], 1 }
 0x42d   :  { %761 = vsyncpa [#allocation6], 1 }
 0x42e   :  { %762 = vsyncpa [#allocation9], 1 }
 0x42f   :  { %763 = vsyncpa [#allocation4], 1 }
 0x430   :  { %764 = vsyncpa [#allocation13], 1 }

</bundles_post_ra>
